<compile_context>
chip_gen: v7x
topology: tpu7x:2x2x1
jax: 0.10.0
libtpu: 0.0.40
codegen_flags: <defaults>
</compile_context>

<pallas_src>
import functools

import jax
import jax.numpy as jnp
from jax.experimental import pallas as pl
from jax.experimental.pallas import tpu as pltpu


FEAT_PAD = 128  # lane width of every padded feature dimension


# ----------------------------------------------------------------------------
# Helpers
# ----------------------------------------------------------------------------
def _apply_act(act, v):
    if act is None:
        return v
    if act == "relu":
        return jnp.maximum(v, 0.0)
    if act == "tanh":
        return jnp.tanh(v)
    raise ValueError(f"unsupported activation: {act}")


def _pad2(a, rows, cols):
    r, c = a.shape
    assert r <= rows and c <= cols, (a.shape, rows, cols)
    return jnp.pad(a, ((0, rows - r), (0, cols - c)))


def _round_up(n, m):
    return ((n + m - 1) // m) * m


# ----------------------------------------------------------------------------
# Fused Pallas kernel: whole FCNet forward for one batch tile
# ----------------------------------------------------------------------------
def _fcnet_fused_kernel(*refs, n_chain, activation, head_specs, compute_dtype):
    """refs = (x, w0, b0, w1, b1, ..., w_out_cat, b_out_cat, out).

    x is a (TB, input_size) block; weights are padded to 128 lanes (first
    weight keeps its exact contracting dim).  Padded weight rows/cols and
    biases are zero, so padded activation lanes stay exactly zero through
    relu/tanh and do not perturb later layers.
    """
    x_ref = refs[0]
    o_ref = refs[-1]
    wb = refs[1:-1]

    h = x_ref[...].astype(compute_dtype)  # (TB, input_size)

    # Input layer + hidden layers: static Python loop, one trace for the LLO.
    for i in range(n_chain):
        w = wb[2 * i][...]                # (in_or_128, 128), compute_dtype
        b = wb[2 * i + 1][...]            # (1, 128), f32
        h = jnp.dot(h, w, preferred_element_type=jnp.float32) + b
        h = _apply_act(activation, h).astype(compute_dtype)

    # All output heads fused into one lane-dense matmul.
    w_out = wb[2 * n_chain][...]
    b_out = wb[2 * n_chain + 1][...]
    y = jnp.dot(h, w_out, preferred_element_type=jnp.float32) + b_out

    # Per-head activations via static lane masks (tanh runs on the EUP slot,
    # computing it over the whole vreg is effectively free at this size).
    lane = jax.lax.broadcasted_iota(jnp.int32, y.shape, dimension=1)
    off = 0
    for outdim, act in head_specs:
        if act is not None:
            seg = (lane >= off) & (lane < off + outdim)
            y = jnp.where(seg, _apply_act(act, y), y)
        off += outdim

    o_ref[...] = y.astype(o_ref.dtype)


# ----------------------------------------------------------------------------
# Parameter construction (pre-transposed, pre-padded, heads pre-concatenated)
# ----------------------------------------------------------------------------
def _init_linear(key, in_dim, out_dim):
    # Deterministic init mimicking nn.Linear default bounds (+/- 1/sqrt(in)).
    kw, kb = jax.random.split(key)
    bound = 1.0 / jnp.sqrt(jnp.float32(in_dim))
    w = jax.random.uniform(kw, (out_dim, in_dim), jnp.float32, -bound, bound)
    b = jax.random.uniform(kb, (out_dim,), jnp.float32, -bound, bound)
    return {"w_t": w.T, "b": b}   # store pre-transposed (in, out)


def make_fcnet_params(key, input_size, layers, out_layers, use_bf16=False):
    # TODO(synk): the layers==[] path in the PyTorch module raises
    # AttributeError in forward (self.input missing before the try); only the
    # non-empty `layers` configuration is supported here.
    assert layers, "layers must be non-empty (PyTorch forward needs self.input)"
    assert all(l == layers[0] for l in layers), (
        "hidden layers are Linear(layers[i], layers[i]); the PyTorch forward "
        "only shape-checks when all hidden widths are equal, got %r" % (layers,))
    out_dims = [int(d) for d, _ in out_layers]
    assert (input_size <= FEAT_PAD and max(layers) <= FEAT_PAD
            and sum(out_dims) <= FEAT_PAD), (
        "this kernel packs every feature dim into 128 lanes; got "
        f"input_size={input_size}, layers={layers}, sum(out_dims)={sum(out_dims)}")

    compute_dtype = jnp.bfloat16 if use_bf16 else jnp.float32

    keys = jax.random.split(key, len(layers) + len(out_layers))
    ki = 0
    chain_raw = [_init_linear(keys[ki], input_size, layers[0])]
    ki += 1
    for i in range(1, len(layers)):
        # Mirrors the PyTorch code's Linear(layers[i], layers[i]).
        chain_raw.append(_init_linear(keys[ki], layers[i], layers[i]))
        ki += 1
    out_raw = []
    for d in out_dims:
        out_raw.append(_init_linear(keys[ki], layers[-1], d))
        ki += 1

    # Pad / concatenate ONCE at init (no per-call pad/concat graph ops).
    chain_w, chain_b = [], []
    for j, l in enumerate(chain_raw):
        in_rows = l["w_t"].shape[0] if j == 0 else FEAT_PAD  # keep exact in-dim of layer 0
        chain_w.append(_pad2(l["w_t"], in_rows, FEAT_PAD).astype(compute_dtype))
        chain_b.append(_pad2(l["b"].reshape(1, -1), 1, FEAT_PAD))  # f32
    w_cat = jnp.concatenate([l["w_t"] for l in out_raw], axis=1)
    b_cat = jnp.concatenate([l["b"] for l in out_raw], axis=0)
    out_w = _pad2(w_cat, FEAT_PAD, FEAT_PAD).astype(compute_dtype)
    out_b = _pad2(b_cat.reshape(1, -1), 1, FEAT_PAD)               # f32

    return {
        "raw": {"chain": chain_raw, "out": out_raw},
        "chain_w": chain_w, "chain_b": chain_b,
        "out_w": out_w, "out_b": out_b,
        "compute_dtype": compute_dtype,
        "input_size": int(input_size),
    }


# ----------------------------------------------------------------------------
# Forward: one pallas_call, grid over batch, weights VMEM-resident
# ----------------------------------------------------------------------------
def fcnet_forward(params, x, activation, out_layers, block_rows=512):
    B, in_dim = x.shape
    assert in_dim == params["input_size"]
    compute_dtype = params["compute_dtype"]
    min_tile = 16 if compute_dtype == jnp.bfloat16 else 8

    chain_w, chain_b = params["chain_w"], params["chain_b"]
    n_chain = len(chain_w)

    # Batch tile: sweepable (default 512 rows), clamped to the batch size.
    tb = max(min_tile, _round_up(min(block_rows, B), min_tile))
    B_pad = _round_up(B, tb)
    x_pad = jnp.pad(x, ((0, B_pad - B), (0, 0))) if B_pad != B else x

    head_specs = tuple((int(d), a) for (d, a) in out_layers)
    kernel = functools.partial(
        _fcnet_fused_kernel,
        n_chain=n_chain,
        activation=activation,
        head_specs=head_specs,
        compute_dtype=compute_dtype,
    )

    # x / out are tiled over the batch grid; all weights/biases use a constant
    # index_map so Pallas keeps them resident across grid steps (no re-DMA).
    flat_inputs = [x_pad]
    in_specs = [pl.BlockSpec((tb, in_dim), lambda i: (i, 0))]
    for w, b in zip(chain_w, chain_b):
        flat_inputs += [w, b]
        in_specs += [pl.BlockSpec(w.shape, lambda i: (0, 0)),
                     pl.BlockSpec(b.shape, lambda i: (0, 0))]
    flat_inputs += [params["out_w"], params["out_b"]]
    in_specs += [pl.BlockSpec(params["out_w"].shape, lambda i: (0, 0)),
                 pl.BlockSpec(params["out_b"].shape, lambda i: (0, 0))]

    out_pad = pl.pallas_call(
        kernel,
        grid=(B_pad // tb,),
        out_shape=jax.ShapeDtypeStruct((B_pad, FEAT_PAD), jnp.float32),
        in_specs=in_specs,
        out_specs=pl.BlockSpec((tb, FEAT_PAD), lambda i: (i, 0)),
        compiler_params=pltpu.CompilerParams(
            # batch axis is embarrassingly parallel -> megacore split on v7x
            dimension_semantics=("parallel",),
            # double-buffered (tb, in)/(tb,128) blocks + resident weights is
            # ~1 MiB; 32 MiB keeps headroom everywhere (<= 48 MiB on v7x).
            vmem_limit_bytes=32 << 20,
        ),
    )(*flat_inputs)

    # TODO(synk): for large-batch consumers, take the lane-dense (B, 128) slab
    # directly (fuse head slicing into the consumer) instead of these wrapper
    # slices, which re-read the slab from HBM.
    outs = []
    off = 0
    for d, _a in out_layers:
        outs.append(out_pad[:B, off:off + d])
        off += d
    return outs if len(outs) > 1 else outs[0]


# ----------------------------------------------------------------------------
# Demo / smoke test
# ----------------------------------------------------------------------------
def _reference_forward(params, x, activation, out_layers):
    def ref_act(a, v):
        if a == "relu":
            return jnp.maximum(v, 0.0)
        if a == "tanh":
            return jnp.tanh(v)
        return v

    chain = params["raw"]["chain"]
    h = x
    for layer in chain:
        h = ref_act(activation, h @ layer["w_t"] + layer["b"])
    return [ref_act(a, h @ l["w_t"] + l["b"])
            for l, (_, a) in zip(params["raw"]["out"], out_layers)]


if __name__ == "__main__":
    key = jax.random.PRNGKey(0)
    kp, kx1, kx2 = jax.random.split(key, 3)

    input_size = 16
    layers = [32, 32]                       # hidden dims (square hidden layers)
    out_layers = [(8, "tanh"), (4, None)]   # (outdim, activation) pairs
    activation = "relu"

    params = make_fcnet_params(kp, input_size, layers, out_layers, use_bf16=False)

    def check(x, block_rows):
        outs = fcnet_forward(params, x, activation, out_layers,
                             block_rows=block_rows)
        outs = jax.block_until_ready(outs)
        outs_list = outs if isinstance(outs, list) else [outs]
        refs = _reference_forward(params, x, activation, out_layers)
        for o, r in zip(outs_list, refs):
            assert o.shape == r.shape, f"shape mismatch {o.shape} vs {r.shape}"
            assert jnp.allclose(o, r, atol=1e-5, rtol=1e-5), "mismatch vs reference"

    # Small batch (single grid step).
    x_small = jax.random.normal(kx1, (2, input_size), jnp.float32)
    check(x_small, block_rows=512)

    # Larger, non-multiple batch with several grid steps (exercises batch
    # tiling, row padding and weight residency across steps).
    x_big = jax.random.normal(kx2, (300, input_size), jnp.float32)
    check(x_big, block_rows=128)

    print("KERNEL_OK")
</pallas_src>

<mosaic_0001>
module attributes {stable_mosaic.version = 11 : i64} {
  func.func @_fcnet_fused_kernel(%arg0: i32, %arg1: memref<8x16xf32, #tpu.memory_space<vmem>>, %arg2: memref<16x128xf32, #tpu.memory_space<vmem>>, %arg3: memref<1x128xf32, #tpu.memory_space<vmem>>, %arg4: memref<128x128xf32, #tpu.memory_space<vmem>>, %arg5: memref<1x128xf32, #tpu.memory_space<vmem>>, %arg6: memref<128x128xf32, #tpu.memory_space<vmem>>, %arg7: memref<1x128xf32, #tpu.memory_space<vmem>>, %arg8: memref<8x128xf32, #tpu.memory_space<vmem>>) attributes {dimension_semantics = [#tpu.dimension_semantics<parallel>], iteration_bounds = array<i64: 1>, scalar_prefetch = 0 : i64, scratch_operands = 0 : i64, tpu.core_type = #tpu.core_type<tc>, window_params = [{transform_indices = @transform_0, window_bounds = array<i64: 8, 16>}, {pipeline_mode = #tpu.pipeline_mode<synchronous>, transform_indices = @transform_1, window_bounds = array<i64: 16, 128>}, {pipeline_mode = #tpu.pipeline_mode<synchronous>, transform_indices = @transform_2, window_bounds = array<i64: 1, 128>}, {pipeline_mode = #tpu.pipeline_mode<synchronous>, transform_indices = @transform_3, window_bounds = array<i64: 128, 128>}, {pipeline_mode = #tpu.pipeline_mode<synchronous>, transform_indices = @transform_4, window_bounds = array<i64: 1, 128>}, {pipeline_mode = #tpu.pipeline_mode<synchronous>, transform_indices = @transform_5, window_bounds = array<i64: 128, 128>}, {pipeline_mode = #tpu.pipeline_mode<synchronous>, transform_indices = @transform_6, window_bounds = array<i64: 1, 128>}, {transform_indices = @transform_7, window_bounds = array<i64: 8, 128>}]} {
    %c0 = arith.constant 0 : index
    %c0_0 = arith.constant 0 : index
    %0 = vector.load %arg1[%c0, %c0_0] : memref<8x16xf32, #tpu.memory_space<vmem>>, vector<8x16xf32>
    %c0_1 = arith.constant 0 : index
    %c0_2 = arith.constant 0 : index
    %1 = vector.load %arg2[%c0_1, %c0_2] : memref<16x128xf32, #tpu.memory_space<vmem>>, vector<16x128xf32>
    %c0_3 = arith.constant 0 : index
    %c0_4 = arith.constant 0 : index
    %2 = vector.load %arg3[%c0_3, %c0_4] : memref<1x128xf32, #tpu.memory_space<vmem>>, vector<1x128xf32>
    %cst = arith.constant dense<0.000000e+00> : vector<8x128xf32>
    %3 = tpu.matmul %0, %1, %cst {dimension_numbers = #tpu.dot_dimension_numbers<[1], [0], [0], [1], [0, 0, 1, 1], [], []>} : vector<8x16xf32>, vector<16x128xf32>, vector<8x128xf32> -> vector<8x128xf32>
    %4 = vector.broadcast %2 : vector<1x128xf32> to vector<8x128xf32>
    %5 = arith.addf %3, %4 : vector<8x128xf32>
    %cst_5 = arith.constant 0.000000e+00 : f32
    %6 = vector.broadcast %cst_5 : f32 to vector<8x128xf32>
    %7 = arith.maximumf %5, %6 : vector<8x128xf32>
    %c0_6 = arith.constant 0 : index
    %c0_7 = arith.constant 0 : index
    %8 = vector.load %arg4[%c0_6, %c0_7] : memref<128x128xf32, #tpu.memory_space<vmem>>, vector<128x128xf32>
    %c0_8 = arith.constant 0 : index
    %c0_9 = arith.constant 0 : index
    %9 = vector.load %arg5[%c0_8, %c0_9] : memref<1x128xf32, #tpu.memory_space<vmem>>, vector<1x128xf32>
    %cst_10 = arith.constant dense<0.000000e+00> : vector<8x128xf32>
    %10 = tpu.matmul %7, %8, %cst_10 {dimension_numbers = #tpu.dot_dimension_numbers<[1], [0], [0], [1], [0, 0, 1, 1], [], []>} : vector<8x128xf32>, vector<128x128xf32>, vector<8x128xf32> -> vector<8x128xf32>
    %11 = vector.broadcast %9 : vector<1x128xf32> to vector<8x128xf32>
    %12 = arith.addf %10, %11 : vector<8x128xf32>
    %cst_11 = arith.constant 0.000000e+00 : f32
    %13 = vector.broadcast %cst_11 : f32 to vector<8x128xf32>
    %14 = arith.maximumf %12, %13 : vector<8x128xf32>
    %c0_12 = arith.constant 0 : index
    %c0_13 = arith.constant 0 : index
    %15 = vector.load %arg6[%c0_12, %c0_13] : memref<128x128xf32, #tpu.memory_space<vmem>>, vector<128x128xf32>
    %c0_14 = arith.constant 0 : index
    %c0_15 = arith.constant 0 : index
    %16 = vector.load %arg7[%c0_14, %c0_15] : memref<1x128xf32, #tpu.memory_space<vmem>>, vector<1x128xf32>
    %cst_16 = arith.constant dense<0.000000e+00> : vector<8x128xf32>
    %17 = tpu.matmul %14, %15, %cst_16 {dimension_numbers = #tpu.dot_dimension_numbers<[1], [0], [0], [1], [0, 0, 1, 1], [], []>} : vector<8x128xf32>, vector<128x128xf32>, vector<8x128xf32> -> vector<8x128xf32>
    %18 = vector.broadcast %16 : vector<1x128xf32> to vector<8x128xf32>
    %19 = arith.addf %17, %18 : vector<8x128xf32>
    %20 = tpu.iota {dimensions = array<i32: 1>} : vector<8x128xi32>
    %c0_i32 = arith.constant 0 : i32
    %21 = vector.broadcast %c0_i32 : i32 to vector<8x128xi32>
    %22 = arith.cmpi sge, %20, %21 : vector<8x128xi32>
    %c8_i32 = arith.constant 8 : i32
    %23 = vector.broadcast %c8_i32 : i32 to vector<8x128xi32>
    %24 = arith.cmpi slt, %20, %23 : vector<8x128xi32>
    %25 = arith.andi %22, %24 : vector<8x128xi1>
    %26 = math.tanh %19 : vector<8x128xf32>
    %27 = arith.select %25, %26, %19 : vector<8x128xi1>, vector<8x128xf32>
    %c0_17 = arith.constant 0 : index
    %c0_18 = arith.constant 0 : index
    %28 = vector.load %arg8[%c0_17, %c0_18] : memref<8x128xf32, #tpu.memory_space<vmem>>, vector<8x128xf32>
    tpu.vector_store %arg8[%c0_17, %c0_18], %27 {strides = array<i32>} : memref<8x128xf32, #tpu.memory_space<vmem>>, vector<8x128xf32>,
    return
  }
  func.func @transform_0(%arg0: i32) -> (i32, i32) {
    %c0_i32 = arith.constant 0 : i32
    %c0_i32_0 = arith.constant 0 : i32
    return %arg0, %c0_i32 : i32, i32
  }
  func.func @transform_1(%arg0: i32) -> (i32, i32) {
    %c0_i32 = arith.constant 0 : i32
    %c0_i32_0 = arith.constant 0 : i32
    %c0_i32_1 = arith.constant 0 : i32
    return %c0_i32, %c0_i32_0 : i32, i32
  }
  func.func @transform_2(%arg0: i32) -> (i32, i32) {
    %c0_i32 = arith.constant 0 : i32
    %c0_i32_0 = arith.constant 0 : i32
    %c0_i32_1 = arith.constant 0 : i32
    return %c0_i32, %c0_i32_0 : i32, i32
  }
  func.func @transform_3(%arg0: i32) -> (i32, i32) {
    %c0_i32 = arith.constant 0 : i32
    %c0_i32_0 = arith.constant 0 : i32
    %c0_i32_1 = arith.constant 0 : i32
    return %c0_i32, %c0_i32_0 : i32, i32
  }
  func.func @transform_4(%arg0: i32) -> (i32, i32) {
    %c0_i32 = arith.constant 0 : i32
    %c0_i32_0 = arith.constant 0 : i32
    %c0_i32_1 = arith.constant 0 : i32
    return %c0_i32, %c0_i32_0 : i32, i32
  }
  func.func @transform_5(%arg0: i32) -> (i32, i32) {
    %c0_i32 = arith.constant 0 : i32
    %c0_i32_0 = arith.constant 0 : i32
    %c0_i32_1 = arith.constant 0 : i32
    return %c0_i32, %c0_i32_0 : i32, i32
  }
  func.func @transform_6(%arg0: i32) -> (i32, i32) {
    %c0_i32 = arith.constant 0 : i32
    %c0_i32_0 = arith.constant 0 : i32
    %c0_i32_1 = arith.constant 0 : i32
    return %c0_i32, %c0_i32_0 : i32, i32
  }
  func.func @transform_7(%arg0: i32) -> (i32, i32) {
    %c0_i32 = arith.constant 0 : i32
    %c0_i32_0 = arith.constant 0 : i32
    return %arg0, %c0_i32 : i32, i32
  }
}

</mosaic_0001>

<bundles_post_ra>
// kernel: tpu_custom_call.1
= control target key start
LH: loop header
LB: loop body
LE: loop exit
PB: predicated region body
PF: predicated region fallthrough
CT: control target
= control target key end

     0   :  { %12 = vsyncpa [#allocation3], 0  ;;  %s824_s0 = inlined_call_operand.hbm [shape: f32[8,16], index: 0, kind: input, shape index: {}]   ;;  %s825_s1 = inlined_call_operand.hbm [shape: f32[16,128], index: 1, kind: input, shape index: {}]   ;;  %s826_s2 = inlined_call_operand.vmem [shape: f32[1,128], index: 2, kind: input, shape index: {}]   ;;  %s827_s3 = inlined_call_operand.hbm [shape: f32[128,128], index: 3, kind: input, shape index: {}]   ;;  %s828_s4 = inlined_call_operand.vmem [shape: f32[1,128], index: 4, kind: input, shape index: {}]   ;;  %s829_s5 = inlined_call_operand.hbm [shape: f32[128,128], index: 5, kind: input, shape index: {}]   ;;  %s830_s6 = inlined_call_operand.vmem [shape: f32[1,128], index: 6, kind: input, shape index: {}]   ;;  %s831_s7 = inlined_call_operand.hbm [shape: f32[8,128], index: 7, kind: output, shape index: {}]  }
   0x1   :  { %13 = vsyncpa [#allocation6], 0 }
   0x2   :  { %14 = vsyncpa [#allocation9], 0 }
   0x3   :  { %15 = vsyncpa [#allocation4], 0  ;;  %s676_s24 = smov [#allocation5]   ;;  %s558_s28 = scalar_lea.hbm %s825_s1, 256 }
   0x4   :  { %s31_s25 = sshll.u32 %s676_s24, 4  ;;  %p559_p0 = scmp.ne.s32.totalorder %s825_s1, %s558_s28  ;;  %s32_s25 = int_to_ptr.vmem [resolvable:$true] %s31_s25 }
   0x5   :  { %p562_p1 = scmp.lt.u32.totalorder %s558_s28, %s825_s1 }
   0x7   :  { %p564_p2 = pnand %p562_p1, %p559_p0 }
   0x9   :  { %567 = shalt.err (!%p564_p2)
}
   0xa   :  { %s568_s10 = scalar_lea.vmem %s32_s25, 256  ;;  %p573_p4 = scmp.lt.s32.totalorder %s32_s25, %s32_s25 }
   0xb   :  { %p569_p3 = scmp.ne.s32.totalorder %s32_s25, %s568_s10  ;;  %p574_p5 = scmp.lt.s32.totalorder %s568_s10, %s568_s10 }
   0xd   :  { %p575_p6 = por %p574_p5, %p573_p4 }
   0xf   :  { %p576_p7 = pnand %p575_p6, %p569_p3 }
  0x11   :  { %579 = shalt.err (!%p576_p7)
}
  0x12   :  { %s677_s11 = smov 128   ;;  %s678_s12 = smov 8  }
  0x13   :  { %37 = dma.hbm_to_vmem [thread:$0]  %s825_s1, 256, %s32_s25, [#allocation6], %s677_s11, %s677_s11, %s678_s12  }
  0x14   :  { %s679_s15 = smov [#allocation2]   ;;  %s680_s17 = smov [#allocation7]  }
  0x15   :  { %s22_s16 = sshll.u32 %s679_s15, 4  ;;  %s45_s18 = sshll.u32 %s680_s17, 4  ;;  %s23_s16 = int_to_ptr.vmem [resolvable:$true] %s22_s16  ;;  %s46_s18 = int_to_ptr.vmem [resolvable:$true] %s45_s18 }
  0x16   :  { %s580_s21 = scalar_lea.hbm %s824_s0, 128 }
  0x17   :  { %p581_p8 = scmp.ne.s32.totalorder %s824_s0, %s580_s21  ;;  %p584_p9 = scmp.lt.u32.totalorder %s580_s21, %s824_s0 }
  0x19   :  { %p586_p10 = pnand %p584_p9, %p581_p8 }
  0x1b   :  { %589 = shalt.err (!%p586_p10)
}
  0x1c   :  { %s590_s1 = scalar_lea.vmem %s23_s16, 128  ;;  %p595_p12 = scmp.lt.s32.totalorder %s23_s16, %s23_s16 }
  0x1d   :  { %p591_p11 = scmp.ne.s32.totalorder %s23_s16, %s590_s1  ;;  %p596_p13 = scmp.lt.s32.totalorder %s590_s1, %s590_s1 }
  0x1f   :  { %p597_p0 = por %p596_p13, %p595_p12 }
  0x21   :  { %p598_p1 = pnand %p597_p0, %p591_p11 }
  0x23   :  { %601 = shalt.err (!%p598_p1)
}
  0x24   :  { %25 = dma.hbm_to_vmem [thread:$0]  %s824_s0, 128, %s23_s16, [#allocation3]  }
  0x25   :  { %s602_s30 = scalar_lea.hbm %s827_s3, 2048 }
  0x26   :  { %p603_p2 = scmp.ne.s32.totalorder %s827_s3, %s602_s30  ;;  %p606_p3 = scmp.lt.u32.totalorder %s602_s30, %s827_s3 }
  0x28   :  { %p608_p4 = pnand %p606_p3, %p603_p2 }
  0x2a   :  { %611 = shalt.err (!%p608_p4)
}
  0x2b   :  { %s612_s14 = scalar_lea.vmem %s46_s18, 2048  ;;  %p617_p6 = scmp.lt.s32.totalorder %s46_s18, %s46_s18 }
  0x2c   :  { %p613_p5 = scmp.ne.s32.totalorder %s46_s18, %s612_s14  ;;  %p618_p7 = scmp.lt.s32.totalorder %s612_s14, %s612_s14 }
  0x2e   :  { %p619_p8 = por %p618_p7, %p617_p6 }
  0x30   :  { %p620_p9 = pnand %p619_p8, %p613_p5 }
  0x32   :  { %623 = shalt.err (!%p620_p9)
}
  0x33   :  { %51 = dma.hbm_to_vmem [thread:$0]  %s827_s3, 2048, %s46_s18, [#allocation6], %s677_s11, %s677_s11, %s678_s12  }
  0x34   :  { %s681_s16 = smov [#allocation8]   ;;  %s624_s21 = scalar_lea.hbm %s829_s5, 2048 }
  0x35   :  { %s59_s17 = sshll.u32 %s681_s16, 4  ;;  %p625_p10 = scmp.ne.s32.totalorder %s829_s5, %s624_s21  ;;  %s60_s17 = int_to_ptr.vmem [resolvable:$true] %s59_s17 }
  0x36   :  { %p628_p11 = scmp.lt.u32.totalorder %s624_s21, %s829_s5 }
  0x38   :  { %p630_p12 = pnand %p628_p11, %p625_p10 }
  0x3a   :  { %633 = shalt.err (!%p630_p12)
}
  0x3b   :  { %s634_s1 = scalar_lea.vmem %s60_s17, 2048  ;;  %p639_p0 = scmp.lt.s32.totalorder %s60_s17, %s60_s17 }
  0x3c   :  { %p635_p13 = scmp.ne.s32.totalorder %s60_s17, %s634_s1  ;;  %p640_p1 = scmp.lt.s32.totalorder %s634_s1, %s634_s1 }
  0x3e   :  { %p641_p2 = por %p640_p1, %p639_p0 }
  0x40   :  { %p642_p3 = pnand %p641_p2, %p635_p13 }
  0x42   :  { %645 = shalt.err (!%p642_p3)
}
  0x43   :  { %65 = dma.hbm_to_vmem [thread:$0]  %s829_s5, 2048, %s60_s17, [#allocation9], %s677_s11, %s677_s11, %s678_s12  }
  0x44   :  { %668 = dma.done.wait [#allocation3], 128  }
  0x45   :  { %669 = vsyncadd [#allocation3], 4294967168 }
  0x46   :  { %670 = dma.done.wait [#allocation6], 2304  }
  0x47   :  { %671 = vsyncadd [#allocation6], 4294964992 }
  0x48   :  { %672 = dma.done.wait [#allocation9], 2048  }
  0x49   :  { %673 = vsyncadd [#allocation9], 4294965248  ;;  %v682_v0 = vmov 0.0|0.0   ;;  %vm683_vm0 = vmmov 0   ;;  %v684_v1 = vmov 0.0   ;;  %v81_v2 = vld [vmem:[#allocation5] sm:$0xff] }
  0x4a   :  { %495 = vmatprep.subr.bf16.mxu0 %v682_v0  ;;  %422 = vmatprep.mubr.msk.f32.mxu0 %vm683_vm0, %v684_v1  ;;  %v82_v3 = vld [vmem:[#allocation5 + $0x8] sm:$0xff]  ;;  %v165_v5 = vld [vmem:[#allocation7] sm:$0xff]  ;;  %v166_v6 = vld [vmem:[#allocation7 + $0x8] sm:$0xff]  ;;  %vm90_vm1 = vcmask 130048   ;;  %s685_s28 = smov [#allocation10]  }
  0x4b   :  { %498 = vmatprep.subr.bf16.mxu1 %v682_v0  ;;  %457 = vmatprep.mubr.msk.f32.mxu1 %vm683_vm0, %v684_v1  ;;  %v496_v4 = vpack.c.bf16 %v82_v3, %v81_v2  ;;  %v167_v7 = vld [vmem:[#allocation7 + $0x10] sm:$0xff]  ;;  %v499_v8 = vpack.c.bf16 %v166_v6, %v165_v5  ;;  %v168_v9 = vld [vmem:[#allocation7 + $0x18] sm:$0xff]  ;;  %v80_v10 = vld [vmem:[#allocation2] sm:$0xff]  ;;  %s366_s29 = sshll.u32 %s685_s28, 4  ;;  %s367_s29 = int_to_ptr.vmem [resolvable:$true] %s366_s29 }
  0x4c   :  { %v502_v11 = vpack.c.bf16 %v168_v9, %v167_v7  ;;  %v169_v12 = vld [vmem:[#allocation7 + $0x20] sm:$0xff]  ;;  %v170_v13 = vld [vmem:[#allocation7 + $0x28] sm:$0xff]  ;;  %v171_v15 = vld [vmem:[#allocation7 + $0x30] sm:$0xff]  ;;  %p651_p5 = scmp.lt.s32.totalorder %s367_s29, %s367_s29 }
  0x4d   :  { %497 = vmatpush3.bf16.msra.mxu0 %v496_v4  ;;  %500 = vmatpush3.bf16.msra.mxu1 %v499_v8  ;;  %v505_v14 = vpack.c.bf16 %v170_v13, %v169_v12  ;;  %v172_v16 = vld [vmem:[#allocation7 + $0x38] sm:$0xff]  ;;  %v173_v18 = vld [vmem:[#allocation7 + $0x40] sm:$0xff]  ;;  %v174_v19 = vld [vmem:[#allocation7 + $0x48] sm:$0xff]  ;;  %v352_v4 = vlaneseq }
  0x4e   :  { %522 = vmatprep.subr.bf16.mxu0 %v682_v0  ;;  %501 = vmatprep.subr.bf16.mxu1 %v682_v0  ;;  %v508_v17 = vpack.c.bf16 %v172_v16, %v171_v15  ;;  %v511_v20 = vpack.c.bf16 %v174_v19, %v173_v18  ;;  %v175_v21 = vld [vmem:[#allocation7 + $0x50] sm:$0xff]  ;;  %v176_v22 = vld [vmem:[#allocation7 + $0x58] sm:$0xff]  ;;  %v177_v24 = vld [vmem:[#allocation7 + $0x60] sm:$0xff] }
  0x4f   :  { %v514_v23 = vpack.c.bf16 %v176_v22, %v175_v21  ;;  %v178_v25 = vld [vmem:[#allocation7 + $0x68] sm:$0xff]  ;;  %v179_v27 = vld [vmem:[#allocation7 + $0x70] sm:$0xff]  ;;  %v180_v28 = vld [vmem:[#allocation7 + $0x78] sm:$0xff]  ;;  %v353_v5 = vand.u32 127, %v352_v4 }
  0x50   :  { %423 = vmatmul.mubr.msk.f32.vlgmr.msra.gmra.mrb[0].mxu0 %vm90_vm1, %v80_v10  ;;  %v517_v26 = vpack.c.bf16 %v178_v25, %v177_v24  ;;  %v520_v29 = vpack.c.bf16 %v180_v28, %v179_v27  ;;  %v259_v30 = vld [vmem:[#allocation8] sm:$0xff]  ;;  %v260_v31 = vld [vmem:[#allocation8 + $0x8] sm:$0xff]  ;;  %v261_v32 = vld [vmem:[#allocation8 + $0x10] sm:$0xff] }
  0x51   :  { %492 = vmatprep.mubr.msk.f32.mxu0 %vm683_vm0, %v684_v1  ;;  %503 = vmatpush3.bf16.msra.mxu1 %v502_v11  ;;  %v523_v33 = vpack.c.bf16 %v260_v31, %v259_v30  ;;  %v262_v34 = vld [vmem:[#allocation8 + $0x18] sm:$0xff]  ;;  %v263_v36 = vld [vmem:[#allocation8 + $0x20] sm:$0xff]  ;;  %v264_v37 = vld [vmem:[#allocation8 + $0x28] sm:$0xff]  ;;  %vm355_vm2 = vcmp.lt.s32.totalorder %v353_v5, 8 }
  0x52   :  { %504 = vmatprep.subr.bf16.mxu1 %v682_v0  ;;  %v526_v35 = vpack.c.bf16 %v262_v34, %v261_v32  ;;  %v529_v38 = vpack.c.bf16 %v264_v37, %v263_v36  ;;  %v265_v39 = vld [vmem:[#allocation8 + $0x30] sm:$0xff]  ;;  %v266_v40 = vld [vmem:[#allocation8 + $0x38] sm:$0xff]  ;;  %v267_v42 = vld [vmem:[#allocation8 + $0x40] sm:$0xff] }
  0x53   :  { %524 = vmatpush3.bf16.msra.mxu0 %v523_v33  ;;  %v532_v41 = vpack.c.bf16 %v266_v40, %v265_v39  ;;  %v268_v43 = vld [vmem:[#allocation8 + $0x48] sm:$0xff]  ;;  %v269_v45 = vld [vmem:[#allocation8 + $0x50] sm:$0xff]  ;;  %v270_v46 = vld [vmem:[#allocation8 + $0x58] sm:$0xff] }
  0x54   :  { %525 = vmatprep.subr.bf16.mxu0 %v682_v0  ;;  %v535_v44 = vpack.c.bf16 %v268_v43, %v267_v42  ;;  %v538_v47 = vpack.c.bf16 %v270_v46, %v269_v45  ;;  %v271_v48 = vld [vmem:[#allocation8 + $0x60] sm:$0xff]  ;;  %v272_v49 = vld [vmem:[#allocation8 + $0x68] sm:$0xff]  ;;  %v273_v56 = vld [vmem:[#allocation8 + $0x70] sm:$0xff] }
  0x55   :  { %506 = vmatpush3.bf16.msra.mxu1 %v505_v14  ;;  %v541_v50 = vpack.c.bf16 %v272_v49, %v271_v48  ;;  %v377_v51 = vld [vmem:[%s826_s2] ss:$0 sm:$0xff]  ;;  %v274_v57 = vld [vmem:[#allocation8 + $0x78] sm:$0xff] }
  0x56   :  { %507 = vmatprep.subr.bf16.mxu1 %v682_v0  ;;  %v544_v58 = vpack.c.bf16 %v274_v57, %v273_v56  ;;  %v379_v59 = vld [vmem:[%s828_s4] ss:$0 sm:$0xff]  ;;  %s646_s4 = scalar_lea.vmem %s367_s29, 128 }
  0x57   :  { %527 = vmatpush3.bf16.msra.mxu0 %v526_v35  ;;  %p647_p4 = scmp.ne.s32.totalorder %s367_s29, %s646_s4  ;;  %p652_p6 = scmp.lt.s32.totalorder %s646_s4, %s646_s4 }
  0x58   :  { %528 = vmatprep.subr.bf16.mxu0 %v682_v0 }
  0x59   :  { %509 = vmatpush3.bf16.msra.mxu1 %v508_v17  ;;  %p653_p7 = por %p652_p6, %p651_p5 }
  0x5a   :  { %510 = vmatprep.subr.bf16.mxu1 %v682_v0 }
  0x5b   :  { %530 = vmatpush3.bf16.msra.mxu0 %v529_v38  ;;  %p654_p8 = pnand %p653_p7, %p647_p4 }
  0x5c   :  { %531 = vmatprep.subr.bf16.mxu0 %v682_v0 }
  0x5d   :  { %512 = vmatpush3.bf16.msra.mxu1 %v511_v20 }
  0x5e   :  { %513 = vmatprep.subr.bf16.mxu1 %v682_v0 }
  0x5f   :  { %533 = vmatpush3.bf16.msra.mxu0 %v532_v41 }
  0x60   :  { %534 = vmatprep.subr.bf16.mxu0 %v682_v0 }
  0x61   :  { %515 = vmatpush3.bf16.msra.mxu1 %v514_v23 }
  0x62   :  { %516 = vmatprep.subr.bf16.mxu1 %v682_v0 }
  0x63   :  { %536 = vmatpush3.bf16.msra.mxu0 %v535_v44 }
  0x64   :  { %537 = vmatprep.subr.bf16.mxu0 %v682_v0 }
  0x65   :  { %518 = vmatpush3.bf16.msra.mxu1 %v517_v26 }
  0x66   :  { %519 = vmatprep.subr.bf16.mxu1 %v682_v0 }
  0x67   :  { %539 = vmatpush3.bf16.msra.mxu0 %v538_v47 }
  0x68   :  { %540 = vmatprep.subr.bf16.mxu0 %v682_v0 }
  0x69   :  { %521 = vmatpush3.bf16.msra.mxu1 %v520_v29 }
  0x6b   :  { %542 = vmatpush3.bf16.msra.mxu0 %v541_v50 }
  0x6c   :  { %543 = vmatprep.subr.bf16.mxu0 %v682_v0  ;;  %v380_v0 = vld [vmem:[%s830_s6] ss:$0 sm:$0xff] }
  0x6f   :  { %545 = vmatpush3.bf16.msra.mxu0 %v544_v58 }
 0x123   :  { %v160_v52 = vpop.f32.mrb[0].mxu0 }
 0x124   :  { %v161_v53 = vadd.f32 %v377_v51, %v160_v52  ;;  %v424_v54 = vpop.f32.mrb[1].mxu0 }
 0x126   :  { %v164_v55 = vmax.f32 %v161_v53, 0.0 }
 0x128   :  { %458 = vmatmul.mubr.f32.vlgmr.msra.gmra.mrb[0].mxu1 %v164_v55 }
 0x1fb   :  { %v254_v60 = vpop.f32.mrb[0].mxu1 }
 0x1fc   :  { %v255_v61 = vadd.f32 %v379_v59, %v254_v60  ;;  %v459_v62 = vpop.f32.mrb[1].mxu1 }
 0x1fe   :  { %v258_v63 = vmax.f32 %v255_v61, 0.0 }
 0x200   :  { %493 = vmatmul.mubr.f32.vlgmr.msra.gmra.mrb[2].mxu0 %v258_v63 }
 0x2d3   :  { %v348_v1 = vpop.f32.mrb[2].mxu0 }
 0x2d4   :  { %v349_v2 = vadd.f32 %v380_v0, %v348_v1  ;;  %v494_v3 = vpop.f32.mrb[3].mxu0 }
 0x2d6   :  { %556 = vtanh.f32 %v349_v2 }
 0x2e0   :  { %v557_v6 = vpop.eup %556 }
 0x2e1   :  { %v358_v7 = vsel %vm355_vm2, %v557_v6, %v349_v2 }
 0x2e2   :  { %359 = vst [vmem:[#allocation10] sm:$0xff] %v358_v7 }
 0x2e3   :  { %657 = shalt.err (!%p654_p8)
}
 0x2e4   :  { %s658_s8 = scalar_lea.hbm %s831_s7, 128 }
 0x2e5   :  { %p659_p9 = scmp.ne.s32.totalorder %s831_s7, %s658_s8  ;;  %p662_p10 = scmp.lt.u32.totalorder %s658_s8, %s831_s7 }
 0x2e7   :  { %p664_p11 = pnand %p662_p10, %p659_p9 }
 0x2e9   :  { %667 = shalt.err (!%p664_p11)
}
 0x2ea   :  { %369 = dma.vmem_to_hbm [thread:$0]  %s367_s29, 128, %s831_s7, [#allocation4]  }
 0x2eb   :  { %674 = dma.done.wait [#allocation4], 128  }
 0x2ec   :  { %675 = vsyncadd [#allocation4], 4294967168 }
 0x2ed   :  { %373 = vsyncpa [#allocation3], 1 }
 0x2ee   :  { %374 = vsyncpa [#allocation6], 1 }
 0x2ef   :  { %375 = vsyncpa [#allocation9], 1 }
 0x2f0   :  { %376 = vsyncpa [#allocation4], 1 }

</bundles_post_ra>
